<compile_context>
chip_gen: v5e
topology: v5e:2x2
jax: 0.10.0
libtpu: 0.0.40
codegen_flags: <defaults>
</compile_context>

<pallas_src>
import functools

import jax
import jax.numpy as jnp
from jax.experimental import pallas as pl
from jax.experimental.pallas import tpu as pltpu


def _round_up(x, m):
    return ((x + m - 1) // m) * m


def _cam_encode_kernel(x_ref, w_ref, b_ref, o_ref, *,
                       depth, d_pad, channel, hw, tile_n, c_chunk):
    # x_ref: (1, Cin, TN)  w_ref: (D_pad+C, Cin)  b_ref: (D_pad+C, 1)
    # o_ref: (1, C, D, TN)
    x = x_ref[0]                                                     # (Cin, TN)

    # Ragged tail: Pallas masks out-of-bounds *stores* of the last block, but the
    # tail *input* columns are undefined -> zero them so no Inf/NaN is ever produced.
    if hw % tile_n != 0:
        col = pl.program_id(0) * tile_n + jax.lax.broadcasted_iota(
            jnp.int32, (1, tile_n), 1)
        x = jnp.where(col < hw, x, jnp.zeros_like(x))

    # One fused matmul for depth + context channels, f32 accumulation.
    y = jnp.dot(w_ref[...], x, preferred_element_type=jnp.float32) + b_ref[...]
    y_d = y[:d_pad]                                                  # (D_pad, TN)
    y_c = y[d_pad:d_pad + channel]                                   # (C, TN)

    # Softmax over depth (sublane axis == PyTorch softmax(dim=1)).
    # Padded depth rows carry bias -1e30 -> exp underflows to 0 (no contribution).
    m = jnp.max(y_d, axis=0, keepdims=True)                          # (1, TN)
    e = jnp.exp(y_d - m)                                             # (D_pad, TN)
    denom = jnp.sum(e, axis=0, keepdims=True)                        # (1, TN)
    soft = e * pl.reciprocal(denom, approx=True)                     # (D_pad, TN)
    if d_pad != depth:
        soft = soft[:depth]                                          # (D, TN)

    # Outer product per column, streamed in small sublane chunks of the C axis so
    # the (C, D, TN) product never materializes as one huge VMEM temp.
    # Lane axis of every store is TN (multiple of 128) -> full-width vst's.
    for c0 in range(0, channel, c_chunk):
        cs = min(c_chunk, channel - c0)
        blk = y_c[c0:c0 + cs][:, None, :] * soft[None, :, :]         # (cs, D, TN)
        o_ref[0, c0:c0 + cs] = blk.astype(o_ref.dtype)


def cam_encode_pallas(x_nchw, weight, bias, *, channel: int, depth: int,
                      tile_n: int = 1024, c_chunk: int = 8,
                      compute_dtype=jnp.bfloat16, out_dtype=jnp.bfloat16):
    """x_nchw: (B, Cin, H, W).  weight: (depth+channel, Cin) (1x1 conv squeezed).
    bias: (depth+channel,).  Returns (B, channel, depth, H, W)."""
    B, c_in, H, W = x_nchw.shape
    assert weight.shape == (depth + channel, c_in)
    assert bias.shape == (depth + channel,)
    HW = H * W

    d_pad = _round_up(depth, 8)          # sublane-aligned split inside the fused matmul

    # Fused weight / bias: [depth rows (padded to d_pad), context rows].
    w_d = weight[:depth]
    w_c = weight[depth:depth + channel]
    b_d = bias[:depth]
    b_c = bias[depth:depth + channel]
    if d_pad != depth:
        w_d = jnp.pad(w_d, ((0, d_pad - depth), (0, 0)))
        b_d = jnp.concatenate([b_d, jnp.full((d_pad - depth,), -1e30, bias.dtype)])
    w_full = jnp.concatenate([w_d, w_c], axis=0).astype(compute_dtype)   # (D_pad+C, Cin)
    b_full = jnp.concatenate([b_d, b_c], axis=0).reshape(-1, 1).astype(jnp.float32)

    # NCHW -> (B, Cin, HW): no transposes, no padding.
    x_mat = x_nchw.reshape(B, c_in, HW).astype(compute_dtype)

    # --- VMEM-aware tile size (v5e/v6e: 128 MiB, v7x: 64 MiB per TensorCore) ---
    in_item = jnp.dtype(compute_dtype).itemsize
    out_item = jnp.dtype(out_dtype).itemsize
    try:
        vmem_cap = int(pltpu.get_tpu_info().vmem_capacity_bytes)
    except Exception:
        vmem_cap = 64 << 20              # conservative fallback (v7x per-TC)
    budget = int(vmem_cap * 0.85)

    wts_bytes = (d_pad + channel) * c_in * in_item + (d_pad + channel) * 4
    per_col = 2 * (c_in * in_item + channel * depth * out_item)   # double-buffered in+out
    headroom = 4 << 20

    tile_cap = max(128, ((budget - 2 * wts_bytes - headroom) // per_col) // 128 * 128)
    tile_req = max(128, (tile_n // 128) * 128)
    tile_n = max(128, min(tile_req, tile_cap, _round_up(HW, 128)))

    need = per_col * tile_n + 2 * wts_bytes + headroom
    vmem_limit = int(min(max(need, 16 << 20), budget))

    hw_tiles = pl.cdiv(HW, tile_n)

    kernel = functools.partial(
        _cam_encode_kernel, depth=depth, d_pad=d_pad, channel=channel,
        hw=HW, tile_n=tile_n, c_chunk=min(c_chunk, channel))

    out = pl.pallas_call(
        kernel,
        out_shape=jax.ShapeDtypeStruct((B, channel, depth, HW), out_dtype),
        grid_spec=pltpu.PrefetchScalarGridSpec(
            num_scalar_prefetch=0,
            grid=(hw_tiles, B),          # hw-tile axis first: good 2-TC sharding on v7x
            in_specs=[
                pl.BlockSpec((1, c_in, tile_n), lambda j, b: (b, 0, j)),
                # Weights / bias are grid-invariant: the pipeline keeps them resident.
                pl.BlockSpec((d_pad + channel, c_in), lambda j, b: (0, 0)),
                pl.BlockSpec((d_pad + channel, 1), lambda j, b: (0, 0)),
            ],
            out_specs=pl.BlockSpec((1, channel, depth, tile_n),
                                   lambda j, b: (b, 0, 0, j)),
        ),
        compiler_params=pltpu.CompilerParams(
            dimension_semantics=("parallel", "parallel"),
            vmem_limit_bytes=vmem_limit,
        ),
    )(x_mat, w_full, b_full)

    # (B, C, D, HW) -> (B, C, D, H, W): contiguous reshape, zero extra HBM passes.
    return out.reshape(B, channel, depth, H, W)


def cam_encode_ref(x_nchw, weight, bias, *, channel: int, depth: int):
    """Pure-JAX reference mirroring the PyTorch forward."""
    y = jnp.einsum('bchw,oc->bohw', x_nchw, weight) + bias[None, :, None, None]
    d = jax.nn.softmax(y[:, :depth], axis=1)                  # (B, D, H, W)
    feat = y[:, depth:depth + channel]                        # (B, C, H, W)
    return d[:, None, :, :, :] * feat[:, :, None, :, :]       # (B, C, D, H, W)


if __name__ == "__main__":
    # Small synthetic shapes consistent with the module (channel/depth scaled down).
    # Cin != channel exercises the general (non-square) 1x1-conv case.
    B, CIN, CH, DEP, H, W = 2, 40, 32, 16, 16, 16

    key = jax.random.PRNGKey(0)
    kx, kw, kb, kx2 = jax.random.split(key, 4)
    x = jax.random.normal(kx, (B, CIN, H, W), dtype=jnp.float32)
    weight = 0.05 * jax.random.normal(kw, (DEP + CH, CIN), dtype=jnp.float32)
    bias = 0.01 * jax.random.normal(kb, (DEP + CH,), dtype=jnp.float32)

    # 1) Exact-math path (f32 compute + f32 output), HW a multiple of 128.
    out = cam_encode_pallas(x, weight, bias, channel=CH, depth=DEP,
                            compute_dtype=jnp.float32, out_dtype=jnp.float32)
    out = jax.block_until_ready(out)
    ref = cam_encode_ref(x, weight, bias, channel=CH, depth=DEP)
    assert out.shape == (B, CH, DEP, H, W)
    # approx reciprocal in the softmax denominator -> slightly looser tolerance
    assert jnp.allclose(out, ref, atol=2e-3, rtol=2e-3), "mismatch vs reference (f32)"

    # 2) Default perf path (bf16 in / bf16 out), ragged HW (6*7=42): tail block is
    #    handled natively by Pallas masking (no pad / no output slice).
    x2 = jax.random.normal(kx2, (B, CIN, 6, 7), dtype=jnp.float32)
    out2 = jax.block_until_ready(
        cam_encode_pallas(x2, weight, bias, channel=CH, depth=DEP))
    ref2 = cam_encode_ref(x2, weight, bias, channel=CH, depth=DEP)
    assert out2.shape == (B, CH, DEP, 6, 7)
    assert out2.dtype == jnp.bfloat16
    assert jnp.allclose(out2.astype(jnp.float32), ref2, atol=1e-2, rtol=5e-2), \
        "mismatch vs reference (bf16, ragged)"

    print("KERNEL_OK")
</pallas_src>

<mosaic_0001>
module attributes {stable_mosaic.version = 11 : i64} {
  func.func @_cam_encode_kernel(%arg0: i32, %arg1: i32, %arg2: memref<1x40x256xf32, #tpu.memory_space<vmem>>, %arg3: memref<48x40xf32, #tpu.memory_space<vmem>>, %arg4: memref<48x1xf32, #tpu.memory_space<vmem>>, %arg5: memref<1x32x16x256xf32, #tpu.memory_space<vmem>>) attributes {dimension_semantics = [#tpu.dimension_semantics<parallel>, #tpu.dimension_semantics<parallel>], iteration_bounds = array<i64: 1, 2>, scalar_prefetch = 0 : i64, scratch_operands = 0 : i64, tpu.core_type = #tpu.core_type<tc>, window_params = [{transform_indices = @transform_0, window_bounds = array<i64: 1, 40, 256>}, {pipeline_mode = #tpu.pipeline_mode<synchronous>, transform_indices = @transform_1, window_bounds = array<i64: 48, 40>}, {pipeline_mode = #tpu.pipeline_mode<synchronous>, transform_indices = @transform_2, window_bounds = array<i64: 48, 1>}, {transform_indices = @transform_3, window_bounds = array<i64: 1, 32, 16, 256>}]} {
    %c0 = arith.constant 0 : index
    %c0_0 = arith.constant 0 : index
    %c0_1 = arith.constant 0 : index
    %0 = vector.load %arg2[%c0, %c0_0, %c0_1] : memref<1x40x256xf32, #tpu.memory_space<vmem>>, vector<1x40x256xf32>
    %1 = vector.shape_cast %0 : vector<1x40x256xf32> to vector<40x256xf32>
    %c0_2 = arith.constant 0 : index
    %c0_3 = arith.constant 0 : index
    %2 = vector.load %arg3[%c0_2, %c0_3] : memref<48x40xf32, #tpu.memory_space<vmem>>, vector<48x40xf32>
    %cst = arith.constant dense<0.000000e+00> : vector<48x256xf32>
    %3 = tpu.matmul %2, %1, %cst {dimension_numbers = #tpu.dot_dimension_numbers<[1], [0], [0], [1], [0, 0, 1, 1], [], []>} : vector<48x40xf32>, vector<40x256xf32>, vector<48x256xf32> -> vector<48x256xf32>
    %c0_4 = arith.constant 0 : index
    %c0_5 = arith.constant 0 : index
    %4 = vector.load %arg4[%c0_4, %c0_5] : memref<48x1xf32, #tpu.memory_space<vmem>>, vector<48x1xf32>
    %5 = vector.broadcast %4 : vector<48x1xf32> to vector<48x256xf32>
    %6 = arith.addf %3, %5 : vector<48x256xf32>
    %7 = vector.extract_strided_slice %6 {offsets = [0, 0], sizes = [16, 256], strides = [1, 1]} : vector<48x256xf32> to vector<16x256xf32>
    %8 = vector.extract_strided_slice %6 {offsets = [16, 0], sizes = [32, 256], strides = [1, 1]} : vector<48x256xf32> to vector<32x256xf32>
    %cst_6 = arith.constant dense<0xFF800000> : vector<256xf32>
    %9 = vector.multi_reduction <maximumf>, %7, %cst_6 [0] : vector<16x256xf32> to vector<256xf32>
    %10 = vector.shape_cast %9 : vector<256xf32> to vector<1x256xf32>
    %11 = vector.broadcast %10 : vector<1x256xf32> to vector<16x256xf32>
    %12 = arith.subf %7, %11 : vector<16x256xf32>
    %13 = math.exp %12 : vector<16x256xf32>
    %cst_7 = arith.constant dense<0.000000e+00> : vector<256xf32>
    %14 = vector.multi_reduction <add>, %13, %cst_7 [0] : vector<16x256xf32> to vector<256xf32>
    %15 = vector.shape_cast %14 : vector<256xf32> to vector<1x256xf32>
    %16 = tpu.reciprocal %15 {approx = true} : vector<1x256xf32> -> vector<1x256xf32>
    %17 = vector.broadcast %16 : vector<1x256xf32> to vector<16x256xf32>
    %18 = arith.mulf %13, %17 : vector<16x256xf32>
    %19 = vector.extract_strided_slice %8 {offsets = [0, 0], sizes = [8, 256], strides = [1, 1]} : vector<32x256xf32> to vector<8x256xf32>
    %20 = vector.shape_cast %19 : vector<8x256xf32> to vector<8x1x256xf32>
    %21 = vector.shape_cast %18 : vector<16x256xf32> to vector<1x16x256xf32>
    %22 = vector.broadcast %20 : vector<8x1x256xf32> to vector<8x16x256xf32>
    %23 = vector.broadcast %21 : vector<1x16x256xf32> to vector<8x16x256xf32>
    %24 = arith.mulf %22, %23 : vector<8x16x256xf32>
    %c0_8 = arith.constant 0 : index
    %c0_9 = arith.constant 0 : index
    %c0_10 = arith.constant 0 : index
    %c0_11 = arith.constant 0 : index
    %25 = vector.load %arg5[%c0_8, %c0_9, %c0_10, %c0_11] : memref<1x32x16x256xf32, #tpu.memory_space<vmem>>, vector<1x8x16x256xf32>
    %26 = vector.shape_cast %25 : vector<1x8x16x256xf32> to vector<8x16x256xf32>
    %27 = vector.shape_cast %24 : vector<8x16x256xf32> to vector<1x8x16x256xf32>
    tpu.vector_store %arg5[%c0_8, %c0_9, %c0_10, %c0_11], %27 {strides = array<i32>} : memref<1x32x16x256xf32, #tpu.memory_space<vmem>>, vector<1x8x16x256xf32>,
    %28 = vector.extract_strided_slice %8 {offsets = [8, 0], sizes = [8, 256], strides = [1, 1]} : vector<32x256xf32> to vector<8x256xf32>
    %29 = vector.shape_cast %28 : vector<8x256xf32> to vector<8x1x256xf32>
    %30 = vector.shape_cast %18 : vector<16x256xf32> to vector<1x16x256xf32>
    %31 = vector.broadcast %29 : vector<8x1x256xf32> to vector<8x16x256xf32>
    %32 = vector.broadcast %30 : vector<1x16x256xf32> to vector<8x16x256xf32>
    %33 = arith.mulf %31, %32 : vector<8x16x256xf32>
    %c0_12 = arith.constant 0 : index
    %c8 = arith.constant 8 : index
    %c0_13 = arith.constant 0 : index
    %c0_14 = arith.constant 0 : index
    %34 = vector.load %arg5[%c0_12, %c8, %c0_13, %c0_14] : memref<1x32x16x256xf32, #tpu.memory_space<vmem>>, vector<1x8x16x256xf32>
    %35 = vector.shape_cast %34 : vector<1x8x16x256xf32> to vector<8x16x256xf32>
    %36 = vector.shape_cast %33 : vector<8x16x256xf32> to vector<1x8x16x256xf32>
    tpu.vector_store %arg5[%c0_12, %c8, %c0_13, %c0_14], %36 {strides = array<i32>} : memref<1x32x16x256xf32, #tpu.memory_space<vmem>>, vector<1x8x16x256xf32>,
    %37 = vector.extract_strided_slice %8 {offsets = [16, 0], sizes = [8, 256], strides = [1, 1]} : vector<32x256xf32> to vector<8x256xf32>
    %38 = vector.shape_cast %37 : vector<8x256xf32> to vector<8x1x256xf32>
    %39 = vector.shape_cast %18 : vector<16x256xf32> to vector<1x16x256xf32>
    %40 = vector.broadcast %38 : vector<8x1x256xf32> to vector<8x16x256xf32>
    %41 = vector.broadcast %39 : vector<1x16x256xf32> to vector<8x16x256xf32>
    %42 = arith.mulf %40, %41 : vector<8x16x256xf32>
    %c0_15 = arith.constant 0 : index
    %c16 = arith.constant 16 : index
    %c0_16 = arith.constant 0 : index
    %c0_17 = arith.constant 0 : index
    %43 = vector.load %arg5[%c0_15, %c16, %c0_16, %c0_17] : memref<1x32x16x256xf32, #tpu.memory_space<vmem>>, vector<1x8x16x256xf32>
    %44 = vector.shape_cast %43 : vector<1x8x16x256xf32> to vector<8x16x256xf32>
    %45 = vector.shape_cast %42 : vector<8x16x256xf32> to vector<1x8x16x256xf32>
    tpu.vector_store %arg5[%c0_15, %c16, %c0_16, %c0_17], %45 {strides = array<i32>} : memref<1x32x16x256xf32, #tpu.memory_space<vmem>>, vector<1x8x16x256xf32>,
    %46 = vector.extract_strided_slice %8 {offsets = [24, 0], sizes = [8, 256], strides = [1, 1]} : vector<32x256xf32> to vector<8x256xf32>
    %47 = vector.shape_cast %46 : vector<8x256xf32> to vector<8x1x256xf32>
    %48 = vector.shape_cast %18 : vector<16x256xf32> to vector<1x16x256xf32>
    %49 = vector.broadcast %47 : vector<8x1x256xf32> to vector<8x16x256xf32>
    %50 = vector.broadcast %48 : vector<1x16x256xf32> to vector<8x16x256xf32>
    %51 = arith.mulf %49, %50 : vector<8x16x256xf32>
    %c0_18 = arith.constant 0 : index
    %c24 = arith.constant 24 : index
    %c0_19 = arith.constant 0 : index
    %c0_20 = arith.constant 0 : index
    %52 = vector.load %arg5[%c0_18, %c24, %c0_19, %c0_20] : memref<1x32x16x256xf32, #tpu.memory_space<vmem>>, vector<1x8x16x256xf32>
    %53 = vector.shape_cast %52 : vector<1x8x16x256xf32> to vector<8x16x256xf32>
    %54 = vector.shape_cast %51 : vector<8x16x256xf32> to vector<1x8x16x256xf32>
    tpu.vector_store %arg5[%c0_18, %c24, %c0_19, %c0_20], %54 {strides = array<i32>} : memref<1x32x16x256xf32, #tpu.memory_space<vmem>>, vector<1x8x16x256xf32>,
    return
  }
  func.func @transform_0(%arg0: i32, %arg1: i32) -> (i32, i32, i32) {
    %c0_i32 = arith.constant 0 : i32
    %c0_i32_0 = arith.constant 0 : i32
    return %arg1, %c0_i32, %arg0 : i32, i32, i32
  }
  func.func @transform_1(%arg0: i32, %arg1: i32) -> (i32, i32) {
    %c0_i32 = arith.constant 0 : i32
    %c0_i32_0 = arith.constant 0 : i32
    %c0_i32_1 = arith.constant 0 : i32
    return %c0_i32, %c0_i32_0 : i32, i32
  }
  func.func @transform_2(%arg0: i32, %arg1: i32) -> (i32, i32) {
    %c0_i32 = arith.constant 0 : i32
    %c0_i32_0 = arith.constant 0 : i32
    %c0_i32_1 = arith.constant 0 : i32
    return %c0_i32, %c0_i32_0 : i32, i32
  }
  func.func @transform_3(%arg0: i32, %arg1: i32) -> (i32, i32, i32, i32) {
    %c0_i32 = arith.constant 0 : i32
    %c0_i32_0 = arith.constant 0 : i32
    %c0_i32_1 = arith.constant 0 : i32
    return %arg1, %c0_i32, %c0_i32_0, %arg0 : i32, i32, i32, i32
  }
}

</mosaic_0001>

<bundles_post_ra>
// kernel: tpu_custom_call.1
= control target key start
LH: loop header
LB: loop body
LE: loop exit
PB: predicated region body
PF: predicated region fallthrough
CT: control target
= control target key end

     0   :  { %8 = vsyncpa [#allocation3], 0  ;;  %s1877_s0 = inlined_call_operand.hbm [shape: f32[2,40,256], index: 0, kind: input, shape index: {}]   ;;  %s1878_s1 = inlined_call_operand.vmem [shape: f32[48,40], index: 1, kind: input, shape index: {}]   ;;  %s1879_s2 = inlined_call_operand.vmem [shape: f32[48,1], index: 2, kind: input, shape index: {}]   ;;  %s1880_s3 = inlined_call_operand.hbm [shape: f32[2,32,16,256], index: 3, kind: output, shape index: {}]  }
   0x1   :  { %10 = vsyncpa [#allocation3 + $0x1], 0 }
   0x2   :  { %11 = vsyncpa [#allocation4], 0 }
   0x3   :  { %13 = vsyncpa [#allocation4 + $0x1], 0  ;;  %s1325_s12 = smov 0   ;;  %s1327_s13 = smov 0  }
   0x4   :  { %s1329_s14 = smov 0   ;;  %s1331_s15 = smov 0  }
   0x5   :  { %s1333_s16 = smov 0   ;;  %s1335_s17 = smov 0  }
   0x6 LB: > { %s970_s18 = sadd.s32 4294967295, %s1298_s17   ;;  %s971_s19 = sadd.s32 4294967294, %s1298_s17   ;;  %s1298_s17 = sphi %s1335_s17, %s19_s17   ;;  %s1294_s16 = sphi %s1333_s16, %s1889_s16   ;;  %s1290_s15 = sphi %s1331_s15, %s1888_s15   ;;  %s1286_s14 = sphi %s1329_s14, %s1887_s14   ;;  %s1282_s13 = sphi %s1327_s13, %s1886_s13   ;;  %s1278_s12 = sphi %s1325_s12, %s1885_s12  }
   0x7   : > { %s28_s20 = sadd.s32 1, %s1294_s16  ;;  %s40_s21 = sadd.s32 1, %s1286_s14 }
   0x8   : > { %p29_p0 = scmp.ge.s32.totalorder %s28_s20, 2  ;;  %p47_p1 = scmp.ne.s32.totalorder %s1286_s14, %s1282_s13 }
   0x9   : > { %p48_p2 = scmp.eq.s32.totalorder %s1298_s17, 0  ;;  %p53_p3 = scmp.ne.s32.totalorder %s1282_s13, %s1278_s12 }
   0xa   : > { %s1891_s20 = smov (%p29_p0, %s28_s20), 0  ;;  %p54_p5 = scmp.eq.s32.totalorder %s970_s18, 0 }
   0xb   : > { %p1366_p4 = por %p48_p2, %p47_p1  ;;  %s35_s23 = ssub.s32 %s1294_s16, %s1891_s20 }
   0xc   : > { %p121_p6 = scmp.eq.s32.totalorder %s970_s18, 1  ;;  %p38_p7 = scmp.eq.s32.totalorder %s35_s23, 0 }
   0xd   : > { %p1372_p8 = por %p54_p5, %p53_p3  ;;  %p127_p10 = scmp.eq.s32.totalorder %s971_s19, 1 }
   0xe   : > { %p1376_p9 = por %p121_p6, %p47_p1  ;;  %p973_p12 = scmp.ge.s32.totalorder %s1298_s17, 2 }
   0xf   : > { %s1381_s26 = scalar_select %p38_p7, %s1286_s14, %s40_s21  }
  0x10   : > { %p1383_p11 = por %p127_p10, %p53_p3  ;;  %p1116_p13 = scmp.lt.s32.totalorder %s1298_s17, 2 }
  0x11   : > { %s153_s28 = sand.u32 1, %s1286_s14   ;;  %s1102_s30 = smul.u32 80, %s1294_s16 }
  0x12   : > { %s1101_s29 = smul.u32 80, %s153_s28  ;;  %p1109_p0 = pnand %p1116_p13, %p1366_p4 }
  0x13   : > { %s164_s6 = scalar_lea.hbm %s1877_s0, %s1102_s30  ;;  %p975_p1 = scmp.ge.s32.totalorder %s1298_s17, 1 }
  0x14   : > { %s157_s7 = scalar_lea.vmem [#allocation2], %s1101_s29  ;;  %s165_s9 = sshll.u32 %s164_s6, 4  ;;  %s166_s9 = int_to_ptr.hbm [resolvable:$true] %s165_s9 }
  0x15   : > { %s167_s8 = sshll.u32 %s157_s7, 4  ;;  %s154_s10 = scalar_lea.sflag [#allocation3], %s153_s28  ;;  %s168_s8 = int_to_ptr.vmem [resolvable:$true] %s167_s8 }
  0x16   : > { %s1300_s11 = smov 256   ;;  %s1301_s18 = smov 16  }
  0x17   : > { %1111 = dma.hbm_to_vmem [thread:$0]  (!%p1109_p0), %s166_s9, 1280, %s168_s8, %s154_s10, %s1300_s11, %s1300_s11, %s1301_s18  }
  0x18   : > { %p175_p2 = scmp.lt.s32.totalorder %s1298_s17, 3 }
  0x1a   : > { %p176_p3 = pnand %p975_p1, %p175_p2 }
  0x1b   : > { %s1399_s19 = sand.u32 (!%p176_p3), 1, %s1282_s13  }
  0x1c   : > { %179 = sbr.rel (%p176_p3) target bundleno = 363 (0x16b), region = 32  ;;  %s182_s22 = scalar_lea.sflag (!%p176_p3), [#allocation3], %s1399_s19 }
  0x1d   : > { %s1103_s21 = smul.u32 (!%p176_p3), 80, %s1399_s19 }
  0x1f   : > { %s185_s23 = scalar_lea.vmem (!%p176_p3), [#allocation2], %s1103_s21 }
  0x21   : > { %1269 = dma.done.wait (%p1372_p8), %s182_s22, 1280  }
  0x22   : > { %1271 = vsyncadd (%p1372_p8), %s182_s22, 4294966016  ;;  %v1302_v0 = vmov 0   ;;  %v219_v1 = vld [vmem:[%s185_s23 + $0x40] sm:$0xff]  ;;  %v220_v2 = vld [vmem:[%s185_s23 + $0x48] sm:$0xff]  ;;  %vm263_vm0 = vcmask 326656   ;;  %vm403_vm1 = vcmask 1041409  }
  0x23   : > { %1171 = vset.pattern.permute.xlu0 %v1302_v0  ;;  %1172 = vset.pattern.permute.xlu1 %v1302_v0  ;;  %v217_v3 = vld [vmem:[%s185_s23 + $0x30] sm:$0xff]  ;;  %v218_v4 = vld [vmem:[%s185_s23 + $0x38] sm:$0xff]  ;;  %v215_v5 = vld [vmem:[%s185_s23 + $0x20] sm:$0xff]  ;;  %vm401_vm2 = vcmask 1040384   ;;  %vm406_vm3 = vcmask 1042434   ;;  %s976_s8 = sshll.u32 %s1399_s19, 10 }
  0x24   : > { %1173 = vset.pattern.permute.xlu2 %v1302_v0  ;;  %293 = vmatpush.msra.mxu0 %v219_v1  ;;  %v216_v6 = vld [vmem:[%s185_s23 + $0x28] sm:$0xff]  ;;  %v227_v7 = vld [vmem:[%s1879_s2] sm:$0xff]  ;;  %v214_v9 = vld [vmem:[%s185_s23 + $0x18] sm:$0xff]  ;;  %vm409_vm4 = vcmask 1043459   ;;  %vm412_vm5 = vcmask 1044484   ;;  %s1487_s9 = scalar_lea.vmem [#allocation5], %s976_s8 }
  0x25   : > { %328 = vmatpush.msra.mxu1 %v220_v2  ;;  %1096 = vmatpush.msra.mxu3 %v220_v2  ;;  %v213_v8 = vld [vmem:[%s185_s23 + $0x10] sm:$0xff]  ;;  %v211_v10 = vld [vmem:[%s185_s23] sm:$0xff]  ;;  %v212_v11 = vld [vmem:[%s185_s23 + $0x8] sm:$0xff]  ;;  %vm415_vm6 = vcmask 1045509   ;;  %vm418_vm7 = vcmask 1046534   ;;  %vm421_vm8 = vcmask 1046528  }
  0x26   : > { %1091 = vmatpush.msra.mxu2 %v219_v1  ;;  %294 = vmatpush.msra.mxu0 %v217_v3  ;;  %v221_v12 = vld [vmem:[%s1878_s1] sm:$0xff]  ;;  %v228_v13 = vld [vmem:[%s1879_s2 + $0x8] sm:$0xff]  ;;  %v224_v14 = vld [vmem:[%s1878_s1 + $0x18] sm:$0xff]  ;;  %s1090_s10 = sshll.u32 %s1290_s15, 10  ;;  %s880_s15 = sshll.u32 %s1487_s9, 4  ;;  %s881_s15 = int_to_ptr.vmem [resolvable:$true] %s880_s15 }
  0x27   : > { %329 = vmatpush.msra.mxu1 %v218_v4  ;;  %235 = vperm.xlu0 %1171, %v227_v7   ;;  %v229_v15 = vld [vmem:[%s1879_s2 + $0x10] sm:$0xff]  ;;  %v231_v16 = vld [vmem:[%s1879_s2 + $0x20] sm:$0xff]  ;;  %v222_v17 = vld [vmem:[%s1878_s1 + $0x8] sm:$0xff]  ;;  %s879_s21 = scalar_lea.hbm %s1880_s3, %s1090_s10  ;;  %s866_s23 = scalar_lea.sflag [#allocation4], %s1399_s19 }
  0x28   : > { %1097 = vmatpush.msra.mxu3 %v218_v4  ;;  %295 = vmatpush.msra.mxu0 %v215_v5  ;;  %v225_v18 = vld [vmem:[%s1878_s1 + $0x20] sm:$0xff]  ;;  %v230_v19 = vld [vmem:[%s1879_s2 + $0x18] sm:$0xff]  ;;  %v232_v20 = vld [vmem:[%s1879_s2 + $0x28] sm:$0xff]  ;;  %s882_s22 = sshll.u32 %s879_s21, 4  ;;  %s1236_s4 = scalar_lea.hbm %s1880_s3, 2048  ;;  %s883_s22 = int_to_ptr.hbm [resolvable:$true] %s882_s22 }
  0x29   : > { %330 = vmatpush.msra.mxu1 %v216_v6  ;;  %1092 = vmatpush.msra.mxu2 %v217_v3  ;;  %v223_v21 = vld [vmem:[%s1878_s1 + $0x10] sm:$0xff]  ;;  %v226_v22 = vld [vmem:[%s1878_s1 + $0x28] sm:$0xff]  ;;  %s1230_s28 = sshra.s32 %s883_s22, 4  ;;  %s1231_s28 = int_to_ptr.hbm [resolvable:$true] %s1230_s28 }
  0x2a   : > { %1098 = vmatpush.msra.mxu3 %v216_v6  ;;  %296 = vmatpush.msra.mxu0 %v213_v8  ;;  %s1232_s29 = scalar_lea.hbm %s1231_s28, 1024  ;;  %p1237_p7 = scmp.lt.s32.totalorder %s1231_s28, %s1880_s3 }
  0x2b   : > { %331 = vmatpush.msra.mxu1 %v214_v9  ;;  %1093 = vmatpush.msra.mxu2 %v215_v5  ;;  %p1233_p4 = scmp.ne.s32.totalorder %s1231_s28, %s1232_s29  ;;  %p1238_p8 = scmp.lt.s32.totalorder %s1236_s4, %s1232_s29 }
  0x2c   : > { %1099 = vmatpush.msra.mxu3 %v214_v9  ;;  %297 = vmatpush.msra.mxu0 %v211_v10 }
  0x2d   : > { %332 = vmatpush.msra.mxu1 %v212_v11  ;;  %977 = vmatmul.msk.f32.vlgmr.msra.gmra.mxu0 %vm263_vm0, %v221_v12  ;;  %p1234_p5 = pnand %p1233_p4, %p1376_p9  ;;  %p1239_p10 = por %p1238_p8, %p1237_p7 }
  0x2e   : > { %983 = vmatmul.msk.f32.vlgmr.msra.gmra.mxu1 %vm263_vm0, %v221_v12  ;;  %1094 = vmatpush.msra.mxu2 %v213_v8 }
  0x2f   : > { %1100 = vmatpush.msra.mxu3 %v212_v11  ;;  %240 = vperm.xlu0 %1171, %v228_v13   ;;  %p1235_p6 = pneg %p1234_p5 }
  0x30   : > { %986 = vmatmul.msk.f32.vlgmr.msra.gmra.mxu3 %vm263_vm0, %v224_v14  ;;  %1095 = vmatpush.msra.mxu2 %v211_v10 }
  0x31   : > { %245 = vperm.xlu1 %1172, %v229_v15   ;;  %980 = vmatmul.msk.f32.vlgmr.msra.gmra.mxu2 %vm263_vm0, %v224_v14  ;;  %p1240_p13 = pnand %p1239_p10, %p1235_p6 }
  0x32   : > { %255 = vperm.xlu2 %1173, %v231_v16  }
  0x35   : > { %978 = vmatmul.msk.f32.gmra.mxu0 %vm263_vm0, %v222_v17 }
  0x36   : > { %984 = vmatmul.msk.f32.gmra.mxu1 %vm263_vm0, %v222_v17 }
  0x38   : > { %987 = vmatmul.msk.f32.gmra.mxu3 %vm263_vm0, %v225_v18 }
  0x39   : > { %250 = vperm.xlu1 %1172, %v230_v19   ;;  %981 = vmatmul.msk.f32.gmra.mxu2 %vm263_vm0, %v225_v18 }
  0x3a   : > { %260 = vperm.xlu2 %1173, %v232_v20  }
  0x3d   : > { %979 = vmatmul.msk.f32.gmra.mxu0 %vm263_vm0, %v223_v21 }
  0x3e   : > { %985 = vmatmul.msk.f32.gmra.mxu1 %vm263_vm0, %v223_v21 }
  0x40   : > { %988 = vmatmul.msk.f32.gmra.mxu3 %vm263_vm0, %v226_v22 }
  0x41   : > { %982 = vmatmul.msk.f32.gmra.mxu2 %vm263_vm0, %v226_v22 }
  0x99   : > { %v236_v23 = vpop.permute.xlu0 %235 }
  0xa1   : > { %v241_v26 = vpop.permute.xlu0 %240 }
  0xa3   : > { %v1455_v55 = vpop.permute.xlu1 %245 }
  0xaa   : > { %v299_v24 = vpop.f32.mrf.mxu0 }
  0xab   : > { %v334_v25 = vpop.f32.mrf.mxu1  ;;  %v300_v29 = vadd.f32 %v299_v24, %v236_v23  ;;  %v251_v1 = vpop.permute.xlu1 %250 }
  0xac   : > { %v335_v30 = vadd.f32 %v334_v25, %v236_v23 }
  0xb2   : > { %v302_v27 = vpop.f32.mrf.mxu0 }
  0xb3   : > { %v337_v28 = vpop.f32.mrf.mxu1  ;;  %v303_v31 = vadd.f32 %v302_v27, %v241_v26  ;;  %v343_v4 = vpop.f32.mrf.mxu3 }
  0xb4   : > { %v338_v32 = vadd.f32 %v337_v28, %v241_v26  ;;  %v344_v5 = vadd.f32 %v343_v4, %v251_v1  ;;  %v308_v10 = vpop.f32.mrf.mxu2 }
  0xb5   : > { %v352_v33 = vmax.f32 %v300_v29, %v303_v31  ;;  %v1457_v11 = vadd.f32 %v308_v10, %v251_v1 }
  0xb6   : > { %v359_v34 = vmax.f32 %v335_v30, %v338_v32  ;;  %v1459_v12 = vrot.slane %v344_v5, 7 }
  0xb7   : > { %v353_v35 = vrot.slane %v352_v33, 4 }
  0xb8   : > { %v360_v36 = vrot.slane %v359_v34, 4  ;;  %v524_v16 = vsel %vm403_vm1, %v1457_v11, %v1459_v12  ;;  %v523_v17 = vsel %vm401_vm2, %v1457_v11, %v1459_v12  ;;  %v526_v19 = vsel %vm406_vm3, %v1457_v11, %v1459_v12 }
  0xb9   : > { %v354_v37 = vmax.f32 %v352_v33, %v353_v35  ;;  %v525_v18 = vrot.slane %v524_v16, 1  ;;  %v538_v23 = vperm.slane %v523_v17, 0  ;;  %v527_v25 = vrot.slane %v526_v19, 2 }
  0xba   : > { %v361_v38 = vmax.f32 %v359_v34, %v360_v36  ;;  %v539_v26 = vperm.slane %v523_v17, 1  ;;  %v536_v5 = vsel %vm421_vm8, %v1459_v12, %v1457_v11 }
  0xbb   : > { %v355_v39 = vrot.slane %v354_v37, 2  ;;  %v540_v27 = vperm.slane %v525_v18, 0  ;;  %v541_v33 = vperm.slane %v525_v18, 1  ;;  %v537_v10 = vrot.slane %v536_v5, 7 }
  0xbc   : > { %v362_v40 = vrot.slane %v361_v38, 2 }
  0xbd   : > { %v356_v41 = vmax.f32 %v354_v37, %v355_v39  ;;  %v542_v39 = vperm.slane %v527_v25, 0 }
  0xbe   : > { %v363_v42 = vmax.f32 %v361_v38, %v362_v40 }
  0xbf   : > { %v357_v43 = vrot.slane %v356_v41, 1 }
  0xc0   : > { %v364_v44 = vrot.slane %v363_v42, 1 }
  0xc1   : > { %v358_v45 = vmax.f32 %v356_v41, %v357_v43  ;;  %v530_v41 = vsel %vm412_vm5, %v1457_v11, %v1459_v12 }
  0xc2   : > { %v365_v46 = vmax.f32 %v363_v42, %v364_v44  ;;  %v543_v42 = vperm.slane %v527_v25, 1 }
  0xc3   : > { %v366_v47 = vsub.f32 %v300_v29, %v358_v45  ;;  %v368_v48 = vsub.f32 %v303_v31, %v358_v45 }
  0xc4   : > { %v367_v49 = vsub.f32 %v335_v30, %v365_v46  ;;  %v369_v50 = vsub.f32 %v338_v32, %v365_v46  ;;  %v528_v32 = vsel %vm409_vm4, %v1457_v11, %v1459_v12  ;;  %v531_v46 = vrot.slane %v530_v41, 4 }
  0xc5   : > { %v370_v51 = vmul.f32 1.442695, %v366_v47  ;;  %v374_v52 = vmul.f32 1.442695, %v368_v48  ;;  %v529_v38 = vrot.slane %v528_v32, 3 }
  0xc6   : > { %v372_v53 = vmul.f32 1.442695, %v367_v49  ;;  %v376_v54 = vmul.f32 1.442695, %v369_v50  ;;  %v532_v49 = vsel %vm415_vm6, %v1457_v11, %v1459_v12 }
  0xc7   : > { %1174 = vpow2.f32 %v370_v51  ;;  %v544_v47 = vperm.slane %v529_v38, 0  ;;  %v545_v50 = vperm.slane %v529_v38, 1 }
  0xc8   : > { %1176 = vpow2.f32 %v374_v52 }
  0xc9   : > { %1178 = vpow2.f32 %v372_v53 }
  0xca   : > { %1180 = vpow2.f32 %v376_v54  ;;  %v533_v54 = vrot.slane %v532_v49, 5 }
  0xcd   : > { %v1175_v56 = vpop.eup %1174 }
  0xce   : > { %v1177_v57 = vpop.eup %1176 }
  0xcf   : > { %v1179_v58 = vpop.eup %1178  ;;  %v378_v59 = vadd.f32 %v1177_v57, %v1175_v56 }
  0xd0   : > { %v1181_v60 = vpop.eup %1180 }
  0xd1   : > { %v379_v61 = vrot.slane %v378_v59, 4  ;;  %v385_v62 = vadd.f32 %v1181_v60, %v1179_v58 }
  0xd3   : > { %v380_v63 = vadd.f32 %v379_v61, %v378_v59  ;;  %v386_v0 = vrot.slane %v385_v62, 4  ;;  %v547_v59 = vperm.slane %v531_v46, 1 }
  0xd5   : > { %v381_v2 = vrot.slane %v380_v63, 2  ;;  %v387_v3 = vadd.f32 %v386_v0, %v385_v62  ;;  %v346_v0 = vpop.f32.mrf.mxu3 }
  0xd7   : > { %v382_v6 = vadd.f32 %v381_v2, %v380_v63  ;;  %v388_v7 = vrot.slane %v387_v3, 2  ;;  %v256_v63 = vpop.permute.xlu2 %255  ;;  %v548_v2 = vperm.slane %v533_v54, 0 }
  0xd8   : > { %v347_v4 = vadd.f32 %v346_v0, %v256_v63 }
  0xd9   : > { %v383_v8 = vrot.slane %v382_v6, 1  ;;  %v389_v9 = vadd.f32 %v388_v7, %v387_v3 }
  0xdb   : > { %v384_v13 = vadd.f32 %v383_v8, %v382_v6  ;;  %v390_v14 = vrot.slane %v389_v9, 1  ;;  %v549_v6 = vperm.slane %v533_v54, 1 }
  0xdd   : > { %1182 = vrcp.f32 %v384_v13  ;;  %v391_v15 = vadd.f32 %v390_v14, %v389_v9 }
  0xdf   : > { %1184 = vrcp.f32 %v391_v15 }
  0xe3   : > { %v1183_v20 = vpop.eup %1182 }
  0xe4   : > { %v1471_v21 = vmul.f32 %v1183_v20, %v1175_v56  ;;  %v1473_v22 = vmul.f32 %v1183_v20, %v1177_v57  ;;  %v546_v56 = vperm.slane %v531_v46, 0  ;;  %v552_v20 = vperm.slane %v537_v10, 0 }
  0xe5   : > { %v1185_v24 = vpop.eup %1184 }
  0xe6   : > { %v1475_v28 = vmul.f32 %v1185_v24, %v1179_v58  ;;  %v1477_v29 = vmul.f32 %v1185_v24, %v1181_v60  ;;  %v570_v30 = vmul.f32 %v538_v23, %v1471_v21  ;;  %v572_v31 = vmul.f32 %v538_v23, %v1473_v22 }
  0xe7   : > { %v574_v36 = vmul.f32 %v540_v27, %v1471_v21  ;;  %v576_v40 = vmul.f32 %v540_v27, %v1473_v22  ;;  %v578_v44 = vmul.f32 %v542_v39, %v1471_v21  ;;  %v580_v48 = vmul.f32 %v542_v39, %v1473_v22 }
  0xe8   : > { %v571_v34 = vmul.f32 %v539_v26, %v1475_v28  ;;  %v573_v35 = vmul.f32 %v539_v26, %v1477_v29  ;;  %989 = vst [vmem:[%s1487_s9 + $0x100] sm:$0xff] %v570_v30  ;;  %v575_v37 = vmul.f32 %v541_v33, %v1475_v28  ;;  %v577_v43 = vmul.f32 %v541_v33, %v1477_v29 }
  0xe9   : > { %991 = vst [vmem:[%s1487_s9 + $0x110] sm:$0xff] %v572_v31  ;;  %v579_v45 = vmul.f32 %v543_v42, %v1475_v28  ;;  %v581_v51 = vmul.f32 %v543_v42, %v1477_v29  ;;  %v582_v52 = vmul.f32 %v544_v47, %v1471_v21  ;;  %v583_v53 = vmul.f32 %v545_v50, %v1475_v28 }
  0xea   : > { %990 = vst [vmem:[%s1487_s9 + $0x108] sm:$0xff] %v571_v34  ;;  %v584_v57 = vmul.f32 %v544_v47, %v1473_v22  ;;  %v534_v58 = vsel %vm418_vm7, %v1457_v11, %v1459_v12  ;;  %v585_v60 = vmul.f32 %v545_v50, %v1477_v29  ;;  %v586_v61 = vmul.f32 %v546_v56, %v1471_v21  ;;  %v311_v11 = vpop.f32.mrf.mxu2 }
  0xeb   : > { %992 = vst [vmem:[%s1487_s9 + $0x118] sm:$0xff] %v573_v35  ;;  %v587_v62 = vmul.f32 %v547_v59, %v1475_v28  ;;  %v535_v1 = vrot.slane %v534_v58, 6  ;;  %v588_v3 = vmul.f32 %v546_v56, %v1473_v22  ;;  %v589_v7 = vmul.f32 %v547_v59, %v1477_v29 }
  0xec   : > { %993 = vst [vmem:[%s1487_s9 + $0x120] sm:$0xff] %v574_v36  ;;  %v590_v8 = vmul.f32 %v548_v2, %v1471_v21  ;;  %v591_v9 = vmul.f32 %v549_v6, %v1475_v28  ;;  %v592_v14 = vmul.f32 %v548_v2, %v1473_v22  ;;  %v1538_v12 = vrot.slane %v347_v4, 7 }
  0xed   : > { %994 = vst [vmem:[%s1487_s9 + $0x128] sm:$0xff] %v575_v37  ;;  %v550_v13 = vperm.slane %v535_v1, 0  ;;  %v551_v15 = vperm.slane %v535_v1, 1  ;;  %v593_v16 = vmul.f32 %v549_v6, %v1477_v29  ;;  %v1542_v17 = vadd.f32 %v311_v11, %v256_v63 }
  0xee   : > { %995 = vst [vmem:[%s1487_s9 + $0x130] sm:$0xff] %v576_v40  ;;  %v553_v24 = vperm.slane %v537_v10, 1  ;;  %v598_v30 = vmul.f32 %v552_v20, %v1471_v21  ;;  %v600_v32 = vmul.f32 %v552_v20, %v1473_v22  ;;  %v305_v20 = vpop.f32.mrf.mxu0 }
  0xef   : > { %996 = vst [vmem:[%s1487_s9 + $0x138] sm:$0xff] %v577_v43  ;;  %v594_v18 = vmul.f32 %v550_v13, %v1471_v21  ;;  %v595_v19 = vmul.f32 %v551_v15, %v1475_v28  ;;  %v596_v23 = vmul.f32 %v550_v13, %v1473_v22  ;;  %v597_v25 = vmul.f32 %v551_v15, %v1477_v29 }
  0xf0   : > { %997 = vst [vmem:[%s1487_s9 + $0x140] sm:$0xff] %v578_v44  ;;  %v638_v26 = vsel %vm401_vm2, %v1542_v17, %v1538_v12  ;;  %v639_v27 = vsel %vm403_vm1, %v1542_v17, %v1538_v12  ;;  %v599_v31 = vmul.f32 %v553_v24, %v1475_v28  ;;  %v601_v35 = vmul.f32 %v553_v24, %v1477_v29 }
  0xf1   : > { %998 = vst [vmem:[%s1487_s9 + $0x148] sm:$0xff] %v579_v45  ;;  %v640_v33 = vrot.slane %v639_v27, 1  ;;  %v653_v34 = vperm.slane %v638_v26, 0  ;;  %v641_v36 = vsel %vm406_vm3, %v1542_v17, %v1538_v12  ;;  %v654_v37 = vperm.slane %v638_v26, 1 }
  0xf2   : > { %999 = vst [vmem:[%s1487_s9 + $0x150] sm:$0xff] %v580_v48  ;;  %v642_v40 = vrot.slane %v641_v36, 2  ;;  %v643_v43 = vsel %vm409_vm4, %v1542_v17, %v1538_v12  ;;  %v649_v4 = vsel %vm418_vm7, %v1542_v17, %v1538_v12  ;;  %v651_v11 = vsel %vm421_vm8, %v1538_v12, %v1542_v17 }
  0xf3   : > { %1000 = vst [vmem:[%s1487_s9 + $0x158] sm:$0xff] %v581_v51  ;;  %v685_v38 = vmul.f32 %v653_v34, %v1471_v21  ;;  %v686_v39 = vmul.f32 %v654_v37, %v1475_v28  ;;  %v655_v41 = vperm.slane %v640_v33, 0  ;;  %v687_v42 = vmul.f32 %v653_v34, %v1473_v22 }
  0xf4   : > { %1001 = vst [vmem:[%s1487_s9 + $0x160] sm:$0xff] %v582_v52  ;;  %v656_v44 = vperm.slane %v640_v33, 1  ;;  %v688_v45 = vmul.f32 %v654_v37, %v1477_v29  ;;  %v644_v48 = vrot.slane %v643_v43, 3  ;;  %v657_v49 = vperm.slane %v642_v40, 0 }
  0xf5   : > { %1002 = vst [vmem:[%s1487_s9 + $0x168] sm:$0xff] %v583_v53  ;;  %v689_v46 = vmul.f32 %v655_v41, %v1471_v21  ;;  %v691_v50 = vmul.f32 %v655_v41, %v1473_v22  ;;  %v645_v51 = vsel %vm412_vm5, %v1542_v17, %v1538_v12  ;;  %v658_v52 = vperm.slane %v642_v40, 1 }
  0xf6   : > { %1003 = vst [vmem:[%s1487_s9 + $0x170] sm:$0xff] %v584_v57  ;;  %v690_v47 = vmul.f32 %v656_v44, %v1475_v28  ;;  %v692_v53 = vmul.f32 %v656_v44, %v1477_v29  ;;  %v693_v54 = vmul.f32 %v657_v49, %v1471_v21  ;;  %v646_v57 = vrot.slane %v645_v51, 4 }
  0xf7   : > { %1004 = vst [vmem:[%s1487_s9 + $0x178] sm:$0xff] %v585_v60  ;;  %v694_v56 = vmul.f32 %v658_v52, %v1475_v28  ;;  %v659_v58 = vperm.slane %v644_v48, 0  ;;  %v695_v59 = vmul.f32 %v657_v49, %v1473_v22  ;;  %v647_v60 = vsel %vm415_vm6, %v1542_v17, %v1538_v12 }
  0xf8   : > { %1005 = vst [vmem:[%s1487_s9 + $0x180] sm:$0xff] %v586_v61  ;;  %v660_v61 = vperm.slane %v644_v48, 1  ;;  %v648_v1 = vrot.slane %v647_v60, 5  ;;  %v661_v2 = vperm.slane %v646_v57, 0  ;;  %v662_v5 = vperm.slane %v646_v57, 1 }
  0xf9   : > { %1006 = vst [vmem:[%s1487_s9 + $0x188] sm:$0xff] %v587_v62  ;;  %v696_v62 = vmul.f32 %v658_v52, %v1477_v29  ;;  %v697_v63 = vmul.f32 %v659_v58, %v1471_v21  ;;  %v650_v10 = vrot.slane %v649_v4, 6  ;;  %v652_v24 = vrot.slane %v651_v11, 7 }
  0xfa   : > { %1007 = vst [vmem:[%s1487_s9 + $0x190] sm:$0xff] %v588_v3  ;;  %v698_v0 = vmul.f32 %v660_v61, %v1475_v28  ;;  %v699_v3 = vmul.f32 %v659_v58, %v1473_v22  ;;  %v700_v6 = vmul.f32 %v660_v61, %v1477_v29  ;;  %v663_v13 = vperm.slane %v648_v1, 0 }
  0xfb   : > { %1008 = vst [vmem:[%s1487_s9 + $0x198] sm:$0xff] %v589_v7  ;;  %v701_v7 = vmul.f32 %v661_v2, %v1471_v21  ;;  %v664_v15 = vperm.slane %v648_v1, 1  ;;  %v666_v17 = vperm.slane %v650_v10, 1  ;;  %v667_v33 = vperm.slane %v652_v24, 0 }
  0xfc   : > { %1009 = vst [vmem:[%s1487_s9 + $0x1a0] sm:$0xff] %v590_v8  ;;  %v340_v8 = vpop.f32.mrf.mxu1  ;;  %v707_v12 = vmul.f32 %v663_v13, %v1473_v22 }
  0xfd   : > { %1010 = vst [vmem:[%s1487_s9 + $0x1a8] sm:$0xff] %v591_v9  ;;  %v702_v9 = vmul.f32 %v662_v5, %v1475_v28  ;;  %v708_v26 = vmul.f32 %v664_v15, %v1477_v29  ;;  %v712_v36 = vmul.f32 %v666_v17, %v1477_v29  ;;  %v715_v40 = vmul.f32 %v667_v33, %v1473_v22 }
  0xfe   : > { %1011 = vst [vmem:[%s1487_s9 + $0x1b0] sm:$0xff] %v592_v14  ;;  %v703_v14 = vmul.f32 %v661_v2, %v1473_v22 }
  0xff   : > { %1012 = vst [vmem:[%s1487_s9 + $0x1b8] sm:$0xff] %v593_v16  ;;  %v704_v16 = vmul.f32 %v662_v5, %v1477_v29 }
 0x100   : > { %1013 = vst [vmem:[%s1487_s9 + $0x1c0] sm:$0xff] %v594_v18  ;;  %v341_v18 = vadd.f32 %v340_v8, %v1455_v55 }
 0x101   : > { %1014 = vst [vmem:[%s1487_s9 + $0x1c8] sm:$0xff] %v595_v19  ;;  %v705_v19 = vmul.f32 %v663_v13, %v1471_v21 }
 0x102   : > { %1015 = vst [vmem:[%s1487_s9 + $0x1d0] sm:$0xff] %v596_v23  ;;  %v706_v23 = vmul.f32 %v664_v15, %v1475_v28  ;;  %v1633_v27 = vrot.slane %v341_v18, 7  ;;  %v349_v18 = vpop.f32.mrf.mxu3 }
 0x103   : > { %1016 = vst [vmem:[%s1487_s9 + $0x1d8] sm:$0xff] %v597_v25  ;;  %v665_v25 = vperm.slane %v650_v10, 0 }
 0x104   : > { %1017 = vst [vmem:[%s1487_s9 + $0x1e0] sm:$0xff] %v598_v30  ;;  %v1636_v30 = vadd.f32 %v305_v20, %v1455_v55 }
 0x105   : > { %1018 = vst [vmem:[%s1487_s9 + $0x1e8] sm:$0xff] %v599_v31  ;;  %v709_v31 = vmul.f32 %v665_v25, %v1471_v21  ;;  %v711_v34 = vmul.f32 %v665_v25, %v1473_v22 }
 0x106   : > { %1019 = vst [vmem:[%s1487_s9 + $0x1f0] sm:$0xff] %v600_v32  ;;  %v710_v32 = vmul.f32 %v666_v17, %v1475_v28  ;;  %v402_v55 = vsel %vm401_vm2, %v1636_v30, %v1633_v27  ;;  %v404_v37 = vsel %vm403_vm1, %v1636_v30, %v1633_v27  ;;  %v407_v44 = vsel %vm406_vm3, %v1636_v30, %v1633_v27 }
 0x107   : > { %1020 = vst [vmem:[%s1487_s9 + $0x1f8] sm:$0xff] %v601_v35  ;;  %v668_v35 = vperm.slane %v652_v24, 1  ;;  %v405_v41 = vrot.slane %v404_v37, 1  ;;  %v408_v48 = vrot.slane %v407_v44, 2  ;;  %v410_v51 = vsel %vm409_vm4, %v1636_v30, %v1633_v27 }
 0x108   : > { %1021 = vst [vmem:[%s1487_s9 + $0x200] sm:$0xff] %v685_v38  ;;  %v713_v38 = vmul.f32 %v667_v33, %v1471_v21  ;;  %v411_v57 = vrot.slane %v410_v51, 3  ;;  %v413_v60 = vsel %vm412_vm5, %v1636_v30, %v1633_v27  ;;  %v416_v4 = vsel %vm415_vm6, %v1636_v30, %v1633_v27  ;;  %v314_v33 = vpop.f32.mrf.mxu2 }
 0x109   : > { %1022 = vst [vmem:[%s1487_s9 + $0x208] sm:$0xff] %v686_v39  ;;  %v714_v39 = vmul.f32 %v668_v35, %v1475_v28  ;;  %v716_v43 = vmul.f32 %v668_v35, %v1477_v29  ;;  %v426_v49 = vperm.slane %v405_v41, 0  ;;  %v427_v52 = vperm.slane %v405_v41, 1 }
 0x10a   : > { %1023 = vst [vmem:[%s1487_s9 + $0x210] sm:$0xff] %v687_v42  ;;  %v424_v42 = vperm.slane %v402_v55, 0  ;;  %v428_v58 = vperm.slane %v408_v48, 0  ;;  %v429_v61 = vperm.slane %v408_v48, 1  ;;  %v414_v1 = vrot.slane %v413_v60, 4 }
 0x10b   : > { %1024 = vst [vmem:[%s1487_s9 + $0x218] sm:$0xff] %v688_v45  ;;  %v425_v45 = vperm.slane %v402_v55, 1  ;;  %v430_v2 = vperm.slane %v411_v57, 0  ;;  %v431_v5 = vperm.slane %v411_v57, 1  ;;  %v422_v17 = vsel %vm421_vm8, %v1633_v27, %v1636_v30 }
 0x10c   : > { %1025 = vst [vmem:[%s1487_s9 + $0x220] sm:$0xff] %v689_v46  ;;  %v456_v46 = vmul.f32 %v424_v42, %v1471_v21  ;;  %v432_v10 = vperm.slane %v414_v1, 0  ;;  %v433_v11 = vperm.slane %v414_v1, 1  ;;  %v423_v35 = vrot.slane %v422_v17, 7 }
 0x10d   : > { %1026 = vst [vmem:[%s1487_s9 + $0x228] sm:$0xff] %v690_v47  ;;  %v457_v47 = vmul.f32 %v425_v45, %v1475_v28  ;;  %v469_v8 = vmul.f32 %v431_v5, %v1475_v28  ;;  %v470_v13 = vmul.f32 %v430_v2, %v1473_v22  ;;  %v471_v15 = vmul.f32 %v431_v5, %v1477_v29 }
 0x10e   : > { %1027 = vst [vmem:[%s1487_s9 + $0x230] sm:$0xff] %v691_v50  ;;  %v458_v50 = vmul.f32 %v424_v42, %v1473_v22  ;;  %v473_v20 = vmul.f32 %v433_v11, %v1475_v28  ;;  %v474_v25 = vmul.f32 %v432_v10, %v1473_v22  ;;  %v438_v41 = vperm.slane %v423_v35, 0 }
 0x10f   : > { %1028 = vst [vmem:[%s1487_s9 + $0x238] sm:$0xff] %v692_v53  ;;  %v459_v53 = vmul.f32 %v425_v45, %v1477_v29 }
 0x110   : > { %1029 = vst [vmem:[%s1487_s9 + $0x240] sm:$0xff] %v693_v54  ;;  %v460_v54 = vmul.f32 %v426_v49, %v1471_v21 }
 0x111   : > { %1030 = vst [vmem:[%s1487_s9 + $0x248] sm:$0xff] %v694_v56  ;;  %v461_v56 = vmul.f32 %v427_v52, %v1475_v28 }
 0x112   : > { %1031 = vst [vmem:[%s1487_s9 + $0x250] sm:$0xff] %v695_v59  ;;  %v462_v59 = vmul.f32 %v426_v49, %v1473_v22  ;;  %v486_v49 = vmul.f32 %v438_v41, %v1473_v22 }
 0x113   : > { %1032 = vst [vmem:[%s1487_s9 + $0x258] sm:$0xff] %v696_v62  ;;  %v463_v62 = vmul.f32 %v427_v52, %v1477_v29 }
 0x114   : > { %1033 = vst [vmem:[%s1487_s9 + $0x260] sm:$0xff] %v697_v63  ;;  %v464_v63 = vmul.f32 %v428_v58, %v1471_v21 }
 0x115   : > { %1034 = vst [vmem:[%s1487_s9 + $0x268] sm:$0xff] %v698_v0  ;;  %v465_v0 = vmul.f32 %v429_v61, %v1475_v28 }
 0x116   : > { %1035 = vst [vmem:[%s1487_s9 + $0x270] sm:$0xff] %v699_v3  ;;  %v466_v3 = vmul.f32 %v428_v58, %v1473_v22 }
 0x117   : > { %1036 = vst [vmem:[%s1487_s9 + $0x278] sm:$0xff] %v700_v6  ;;  %v467_v6 = vmul.f32 %v429_v61, %v1477_v29 }
 0x118   : > { %1037 = vst [vmem:[%s1487_s9 + $0x280] sm:$0xff] %v701_v7  ;;  %v468_v7 = vmul.f32 %v430_v2, %v1471_v21 }
 0x119   : > { %1038 = vst [vmem:[%s1487_s9 + $0x288] sm:$0xff] %v702_v9  ;;  %v417_v9 = vrot.slane %v416_v4, 5 }
 0x11a   : > { %1039 = vst [vmem:[%s1487_s9 + $0x290] sm:$0xff] %v703_v14  ;;  %v419_v14 = vsel %vm418_vm7, %v1636_v30, %v1633_v27 }
 0x11b   : > { %1040 = vst [vmem:[%s1487_s9 + $0x298] sm:$0xff] %v704_v16  ;;  %v261_v16 = vpop.permute.xlu2 %260  ;;  %v434_v24 = vperm.slane %v417_v9, 0 }
 0x11c   : > { %1041 = vst [vmem:[%s1487_s9 + $0x2a0] sm:$0xff] %v705_v19  ;;  %v472_v19 = vmul.f32 %v432_v10, %v1471_v21 }
 0x11d   : > { %1042 = vst [vmem:[%s1487_s9 + $0x2a8] sm:$0xff] %v706_v23  ;;  %v420_v23 = vrot.slane %v419_v14, 6  ;;  %v478_v55 = vmul.f32 %v434_v24, %v1473_v22 }
 0x11e   : > { %1043 = vst [vmem:[%s1487_s9 + $0x2b0] sm:$0xff] %v707_v12  ;;  %v350_v12 = vadd.f32 %v349_v18, %v261_v16 }
 0x11f   : > { %1044 = vst [vmem:[%s1487_s9 + $0x2b8] sm:$0xff] %v708_v26  ;;  %v435_v26 = vperm.slane %v417_v9, 1  ;;  %v437_v30 = vperm.slane %v420_v23, 1 }
 0x120   : > { %1045 = vst [vmem:[%s1487_s9 + $0x2c0] sm:$0xff] %v709_v31  ;;  %v475_v31 = vmul.f32 %v433_v11, %v1477_v29  ;;  %v1724_v27 = vrot.slane %v350_v12, 7 }
 0x121   : > { %1046 = vst [vmem:[%s1487_s9 + $0x2c8] sm:$0xff] %v710_v32  ;;  %v476_v32 = vmul.f32 %v434_v24, %v1471_v21  ;;  %v479_v37 = vmul.f32 %v435_v26, %v1477_v29  ;;  %v483_v44 = vmul.f32 %v437_v30, %v1477_v29 }
 0x122   : > { %1047 = vst [vmem:[%s1487_s9 + $0x2d0] sm:$0xff] %v711_v34  ;;  %v477_v34 = vmul.f32 %v435_v26, %v1475_v28 }
 0x123   : > { %1048 = vst [vmem:[%s1487_s9 + $0x2d8] sm:$0xff] %v712_v36  ;;  %v436_v36 = vperm.slane %v420_v23, 0 }
 0x124   : > { %1049 = vst [vmem:[%s1487_s9 + $0x2e0] sm:$0xff] %v713_v38  ;;  %v1728_v38 = vadd.f32 %v314_v33, %v261_v16 }
 0x125   : > { %1050 = vst [vmem:[%s1487_s9 + $0x2e8] sm:$0xff] %v714_v39  ;;  %v480_v39 = vmul.f32 %v436_v36, %v1471_v21  ;;  %v482_v42 = vmul.f32 %v436_v36, %v1473_v22 }
 0x126   : > { %1051 = vst [vmem:[%s1487_s9 + $0x2f0] sm:$0xff] %v715_v40  ;;  %v481_v40 = vmul.f32 %v437_v30, %v1475_v28  ;;  %v753_v45 = vsel %vm401_vm2, %v1728_v38, %v1724_v27  ;;  %v758_v61 = vsel %vm409_vm4, %v1728_v38, %v1724_v27  ;;  %v760_v5 = vsel %vm412_vm5, %v1728_v38, %v1724_v27 }
 0x127   : > { %1052 = vst [vmem:[%s1487_s9 + $0x2f8] sm:$0xff] %v716_v43  ;;  %v439_v43 = vperm.slane %v423_v35, 1  ;;  %v768_v51 = vperm.slane %v753_v45, 0  ;;  %v759_v2 = vrot.slane %v758_v61, 3  ;;  %v761_v10 = vrot.slane %v760_v5, 4 }
 0x128   : > { %488 = vst [vmem:[%s1487_s9] sm:$0xff] %v456_v46  ;;  %v754_v46 = vsel %vm403_vm1, %v1728_v38, %v1724_v27  ;;  %v762_v11 = vsel %vm415_vm6, %v1728_v38, %v1724_v27  ;;  %v766_v35 = vsel %vm421_vm8, %v1724_v27, %v1728_v38 }
 0x129   : > { %489 = vst [vmem:[%s1487_s9 + $0x8] sm:$0xff] %v457_v47  ;;  %v484_v47 = vmul.f32 %v438_v41, %v1471_v21  ;;  %v485_v48 = vmul.f32 %v439_v43, %v1475_v28  ;;  %v487_v52 = vmul.f32 %v439_v43, %v1477_v29  ;;  %v802_v60 = vmul.f32 %v768_v51, %v1473_v22 }
 0x12a   : > { %490 = vst [vmem:[%s1487_s9 + $0x10] sm:$0xff] %v458_v50  ;;  %v755_v50 = vrot.slane %v754_v46, 1  ;;  %v776_v23 = vperm.slane %v761_v10, 0  ;;  %v777_v12 = vperm.slane %v761_v10, 1 }
 0x12b   : > { %491 = vst [vmem:[%s1487_s9 + $0x18] sm:$0xff] %v459_v53  ;;  %v756_v53 = vsel %vm406_vm3, %v1728_v38, %v1724_v27 }
 0x12c   : > { %492 = vst [vmem:[%s1487_s9 + $0x20] sm:$0xff] %v460_v54  ;;  %v769_v54 = vperm.slane %v753_v45, 1  ;;  %v757_v58 = vrot.slane %v756_v53, 2  ;;  %v816_v26 = vmul.f32 %v776_v23, %v1471_v21 }
 0x12d   : > { %493 = vst [vmem:[%s1487_s9 + $0x28] sm:$0xff] %v461_v56  ;;  %v800_v56 = vmul.f32 %v768_v51, %v1471_v21 }
 0x12e   : > { %494 = vst [vmem:[%s1487_s9 + $0x30] sm:$0xff] %v462_v59  ;;  %v801_v57 = vmul.f32 %v769_v54, %v1475_v28  ;;  %v770_v59 = vperm.slane %v755_v50, 0 }
 0x12f   : > { %495 = vst [vmem:[%s1487_s9 + $0x38] sm:$0xff] %v463_v62  ;;  %v771_v62 = vperm.slane %v755_v50, 1 }
 0x130   : > { %496 = vst [vmem:[%s1487_s9 + $0x40] sm:$0xff] %v464_v63  ;;  %v803_v63 = vmul.f32 %v769_v54, %v1477_v29  ;;  %v806_v4 = vmul.f32 %v770_v59, %v1473_v22 }
 0x131   : > { %497 = vst [vmem:[%s1487_s9 + $0x48] sm:$0xff] %v465_v0  ;;  %v804_v0 = vmul.f32 %v770_v59, %v1471_v21  ;;  %v805_v1 = vmul.f32 %v771_v62, %v1475_v28 }
 0x132   : > { %498 = vst [vmem:[%s1487_s9 + $0x50] sm:$0xff] %v466_v3  ;;  %v772_v3 = vperm.slane %v757_v58, 0 }
 0x133   : > { %499 = vst [vmem:[%s1487_s9 + $0x58] sm:$0xff] %v467_v6  ;;  %v773_v6 = vperm.slane %v757_v58, 1 }
 0x134   : > { %500 = vst [vmem:[%s1487_s9 + $0x60] sm:$0xff] %v468_v7  ;;  %v807_v7 = vmul.f32 %v771_v62, %v1477_v29  ;;  %v810_v14 = vmul.f32 %v772_v3, %v1473_v22 }
 0x135   : > { %501 = vst [vmem:[%s1487_s9 + $0x68] sm:$0xff] %v469_v8  ;;  %v808_v8 = vmul.f32 %v772_v3, %v1471_v21  ;;  %v809_v9 = vmul.f32 %v773_v6, %v1475_v28  ;;  %v811_v16 = vmul.f32 %v773_v6, %v1477_v29 }
 0x136   : > { %502 = vst [vmem:[%s1487_s9 + $0x70] sm:$0xff] %v470_v13  ;;  %v774_v13 = vperm.slane %v759_v2, 0 }
 0x137   : > { %503 = vst [vmem:[%s1487_s9 + $0x78] sm:$0xff] %v471_v15  ;;  %v775_v15 = vperm.slane %v759_v2, 1 }
 0x138   : > { %504 = vst [vmem:[%s1487_s9 + $0x80] sm:$0xff] %v472_v19  ;;  %v812_v18 = vmul.f32 %v774_v13, %v1471_v21  ;;  %v814_v24 = vmul.f32 %v774_v13, %v1473_v22 }
 0x139   : > { %505 = vst [vmem:[%s1487_s9 + $0x88] sm:$0xff] %v473_v20  ;;  %v813_v19 = vmul.f32 %v775_v15, %v1475_v28  ;;  %v763_v20 = vrot.slane %v762_v11, 5  ;;  %v815_v17 = vmul.f32 %v775_v15, %v1477_v29 }
 0x13a   : > { %506 = vst [vmem:[%s1487_s9 + $0x90] sm:$0xff] %v474_v25  ;;  %v764_v25 = vsel %vm418_vm7, %v1728_v38, %v1724_v27 }
 0x13b   : > { %507 = vst [vmem:[%s1487_s9 + $0x98] sm:$0xff] %v475_v31  ;;  %v817_v31 = vmul.f32 %v777_v12, %v1475_v28  ;;  %v778_v33 = vperm.slane %v763_v20, 0  ;;  %v779_v36 = vperm.slane %v763_v20, 1 }
 0x13c   : > { %508 = vst [vmem:[%s1487_s9 + $0xa0] sm:$0xff] %v476_v32  ;;  %v765_v32 = vrot.slane %v764_v25, 6 }
 0x13d   : > { %509 = vst [vmem:[%s1487_s9 + $0xa8] sm:$0xff] %v477_v34  ;;  %v818_v34 = vmul.f32 %v776_v23, %v1473_v22  ;;  %v820_v30 = vmul.f32 %v778_v33, %v1471_v21  ;;  %v822_v41 = vmul.f32 %v778_v33, %v1473_v22  ;;  %v823_v38 = vmul.f32 %v779_v36, %v1477_v29 }
 0x13e   : > { %510 = vst [vmem:[%s1487_s9 + $0xb0] sm:$0xff] %v478_v55  ;;  %v819_v55 = vmul.f32 %v777_v12, %v1477_v29  ;;  %v781_v27 = vperm.slane %v765_v32, 1 }
 0x13f   : > { %511 = vst [vmem:[%s1487_s9 + $0xb8] sm:$0xff] %v479_v37  ;;  %v821_v37 = vmul.f32 %v779_v36, %v1475_v28 }
 0x140   : > { %512 = vst [vmem:[%s1487_s9 + $0xc0] sm:$0xff] %v480_v39  ;;  %v767_v39 = vrot.slane %v766_v35, 7  ;;  %v825_v43 = vmul.f32 %v781_v27, %v1475_v28 }
 0x141   : > { %513 = vst [vmem:[%s1487_s9 + $0xc8] sm:$0xff] %v481_v40  ;;  %v780_v40 = vperm.slane %v765_v32, 0 }
 0x142   : > { %514 = vst [vmem:[%s1487_s9 + $0xd0] sm:$0xff] %v482_v42  ;;  %v783_v46 = vperm.slane %v767_v39, 1 }
 0x143   : > { %515 = vst [vmem:[%s1487_s9 + $0xd8] sm:$0xff] %v483_v44  ;;  %v824_v42 = vmul.f32 %v780_v40, %v1471_v21  ;;  %v782_v44 = vperm.slane %v767_v39, 0  ;;  %v826_v45 = vmul.f32 %v780_v40, %v1473_v22 }
 0x144   : > { %516 = vst [vmem:[%s1487_s9 + $0xe0] sm:$0xff] %v484_v47  ;;  %v827_v47 = vmul.f32 %v781_v27, %v1477_v29  ;;  %v831_v51 = vmul.f32 %v783_v46, %v1477_v29 }
 0x145   : > { %517 = vst [vmem:[%s1487_s9 + $0xe8] sm:$0xff] %v485_v48  ;;  %v828_v48 = vmul.f32 %v782_v44, %v1471_v21  ;;  %v830_v50 = vmul.f32 %v782_v44, %v1473_v22 }
 0x146   : > { %518 = vst [vmem:[%s1487_s9 + $0xf0] sm:$0xff] %v486_v49  ;;  %v829_v49 = vmul.f32 %v783_v46, %v1475_v28 }
 0x147   : > { %519 = vst [vmem:[%s1487_s9 + $0xf8] sm:$0xff] %v487_v52 }
 0x148   : > { %1053 = vst [vmem:[%s1487_s9 + $0x300] sm:$0xff] %v800_v56 }
 0x149   : > { %1054 = vst [vmem:[%s1487_s9 + $0x308] sm:$0xff] %v801_v57 }
 0x14a   : > { %1055 = vst [vmem:[%s1487_s9 + $0x310] sm:$0xff] %v802_v60 }
 0x14b   : > { %1056 = vst [vmem:[%s1487_s9 + $0x318] sm:$0xff] %v803_v63 }
 0x14c   : > { %1057 = vst [vmem:[%s1487_s9 + $0x320] sm:$0xff] %v804_v0 }
 0x14d   : > { %1058 = vst [vmem:[%s1487_s9 + $0x328] sm:$0xff] %v805_v1 }
 0x14e   : > { %1059 = vst [vmem:[%s1487_s9 + $0x330] sm:$0xff] %v806_v4 }
 0x14f   : > { %1060 = vst [vmem:[%s1487_s9 + $0x338] sm:$0xff] %v807_v7 }
 0x150   : > { %1061 = vst [vmem:[%s1487_s9 + $0x340] sm:$0xff] %v808_v8 }
 0x151   : > { %1062 = vst [vmem:[%s1487_s9 + $0x348] sm:$0xff] %v809_v9 }
 0x152   : > { %1063 = vst [vmem:[%s1487_s9 + $0x350] sm:$0xff] %v810_v14 }
 0x153   : > { %1064 = vst [vmem:[%s1487_s9 + $0x358] sm:$0xff] %v811_v16 }
 0x154   : > { %1065 = vst [vmem:[%s1487_s9 + $0x360] sm:$0xff] %v812_v18 }
 0x155   : > { %1066 = vst [vmem:[%s1487_s9 + $0x368] sm:$0xff] %v813_v19 }
 0x156   : > { %1067 = vst [vmem:[%s1487_s9 + $0x370] sm:$0xff] %v814_v24 }
 0x157   : > { %1068 = vst [vmem:[%s1487_s9 + $0x378] sm:$0xff] %v815_v17 }
 0x158   : > { %1069 = vst [vmem:[%s1487_s9 + $0x380] sm:$0xff] %v816_v26 }
 0x159   : > { %1070 = vst [vmem:[%s1487_s9 + $0x388] sm:$0xff] %v817_v31 }
 0x15a   : > { %1071 = vst [vmem:[%s1487_s9 + $0x390] sm:$0xff] %v818_v34 }
 0x15b   : > { %1072 = vst [vmem:[%s1487_s9 + $0x398] sm:$0xff] %v819_v55 }
 0x15c   : > { %1073 = vst [vmem:[%s1487_s9 + $0x3a0] sm:$0xff] %v820_v30 }
 0x15d   : > { %1074 = vst [vmem:[%s1487_s9 + $0x3a8] sm:$0xff] %v821_v37 }
 0x15e   : > { %1075 = vst [vmem:[%s1487_s9 + $0x3b0] sm:$0xff] %v822_v41 }
 0x15f   : > { %1076 = vst [vmem:[%s1487_s9 + $0x3b8] sm:$0xff] %v823_v38 }
 0x160   : > { %1077 = vst [vmem:[%s1487_s9 + $0x3c0] sm:$0xff] %v824_v42 }
 0x161   : > { %1078 = vst [vmem:[%s1487_s9 + $0x3c8] sm:$0xff] %v825_v43 }
 0x162   : > { %1079 = vst [vmem:[%s1487_s9 + $0x3d0] sm:$0xff] %v826_v45 }
 0x163   : > { %1080 = vst [vmem:[%s1487_s9 + $0x3d8] sm:$0xff] %v827_v47 }
 0x164   : > { %1081 = vst [vmem:[%s1487_s9 + $0x3e0] sm:$0xff] %v828_v48 }
 0x165   : > { %1082 = vst [vmem:[%s1487_s9 + $0x3e8] sm:$0xff] %v829_v49 }
 0x166   : > { %1083 = vst [vmem:[%s1487_s9 + $0x3f0] sm:$0xff] %v830_v50 }
 0x167   : > { %1084 = vst [vmem:[%s1487_s9 + $0x3f8] sm:$0xff] %v831_v51 }
 0x168   : > { %1243 = shalt.err (!%p1240_p13)
}
 0x169   : > { %s1303_s19 = smov 256   ;;  %s1304_s7 = smov 16  }
 0x16a   : > { %1106 = dma.vmem_to_hbm [thread:$0]  (%p1376_p9), %s881_s15, 16384, %s883_s22, %s866_s23, %s1303_s19, %s1303_s19, %s1304_s7  }
 0x16b PF: > { %s897_s8 = sand.u32 1, %s1278_s12   ;;  %p1113_p0 = pnand %p973_p12, %p1383_p11 }
 0x16c   : > { %s898_s9 = scalar_lea.sflag [#allocation4], %s897_s8 }
 0x16d   : > { %p1114_p1 = pneg %p1113_p0 }
 0x16f   : > { %1273 = dma.done.wait (%p1114_p1), %s898_s9, 16384  }
 0x170   : > { %1275 = vsyncadd (%p1114_p1), %s898_s9, 4294950912  ;;  %s19_s17 = sadd.s32 1, %s1298_s17   ;;  %s1885_s12 = smov %s1282_s13 }
 0x171   : > { %p16_p2 = scmp.ge.s32.totalorder %s19_s17, 4   ;;  %s1886_s13 = smov %s1286_s14 }
 0x172   : > { %s1887_s14 = smov %s1381_s26  ;;  %s1888_s15 = smov %s1294_s16 }
 0x173   : > { %s1889_s16 = smov %s1891_s20  ;;  %18 = sbr.rel (!%p16_p2) target bundleno = 6 (0x6), region = 80 }
 0x178   :  { %904 = vsyncpa [#allocation3], 1 }
 0x179   :  { %906 = vsyncpa [#allocation3 + $0x1], 1 }
 0x17a   :  { %907 = vsyncpa [#allocation4], 1 }
 0x17b   :  { %909 = vsyncpa [#allocation4 + $0x1], 1 }

</bundles_post_ra>
